<compile_context>
chip_gen: v7x
topology: tpu7x:2x2x1
jax: 0.10.0
libtpu: 0.0.40
codegen_flags: <defaults>
</compile_context>

<pallas_src>
import functools

import jax
import jax.numpy as jnp
from jax.experimental import pallas as pl
from jax.experimental.pallas import tpu as pltpu

_LANES = 128
_NUM_SPLITS = 2             # leading "parallel" grid axis (2 TensorCores on v7x)
_DEFAULT_TILE_ROWS = 4096   # 4096 x 128 x 4B = 2 MiB per f32 input block


def _combined_loss_kernel(yp_ref, yt_ref, out_ref, acc_ref, *,
                          tile_rows, blocks_per_split, rows, last_block,
                          needs_mask, has_clamped, binary_targets):
    c = pl.program_id(0)   # core split (parallel)
    s = pl.program_id(1)   # step within the split (reduction axis)

    @pl.when(s == 0)
    def _():
        acc_ref[...] = jnp.zeros_like(acc_ref)

    # Cast on the VMEM tile (inputs arrive in their native dtype).
    p = yp_ref[...].astype(jnp.float32)
    t = yt_ref[...].astype(jnp.float32)

    def tile_sum(x):  # (tile_rows, 128) -> (8, 128): pure VPU vreg adds
        return jnp.sum(x.reshape(-1, 8, _LANES), axis=0)

    def accumulate(p, t):
        # BCE with torch.nn.BCELoss clamping semantics (log >= -100).  Pad /
        # masked elements (p = t = 0) contribute exactly 0 on both paths.
        if binary_targets:
            # Single EUP log per element (valid only for {0,1} targets).
            bce_elem = -jnp.maximum(
                jnp.log(jnp.where(t > 0.5, p, 1.0 - p)), -100.0)
        else:
            log_p = jnp.maximum(jnp.log(p), -100.0)
            log_1mp = jnp.maximum(jnp.log(1.0 - p), -100.0)
            bce_elem = -(t * log_p + (1.0 - t) * log_1mp)
        acc_ref[0] += tile_sum(bce_elem)   # sum of BCE terms
        acc_ref[1] += tile_sum(t * p)      # intersection
        acc_ref[2] += tile_sum(t)          # sum(y_true)
        acc_ref[3] += tile_sum(p)          # sum(y_pred)

    blk = c * blocks_per_split + s

    if needs_mask:
        # Fully-in-range blocks: fast unmasked path.
        @pl.when(blk < last_block)
        def _():
            accumulate(p, t)

        # Single partial last block: mask the rows past the real row count
        # (everything inside `rows` is real data or explicit zero pad).
        valid_rows_last = rows - last_block * tile_rows   # static Python int

        @pl.when(blk == last_block)
        def _():
            rows_iota = jax.lax.broadcasted_iota(jnp.int32, p.shape, 0)
            rmask = rows_iota < valid_rows_last
            accumulate(jnp.where(rmask, p, 0.0), jnp.where(rmask, t, 0.0))
        # blk > last_block (clamped duplicate blocks): skipped entirely.
    elif has_clamped:
        @pl.when(blk <= last_block)
        def _():
            accumulate(p, t)
    else:
        # Common aligned case: no predication, no masking at all.
        accumulate(p, t)

    @pl.when(s == pl.num_programs(1) - 1)
    def _():
        out_ref[0] = acc_ref[...]          # lane-dense per-split partial sums


def combined_loss(y_pred, y_true, *, weight_bce=1.0, weight_dice=1.0,
                  weight_iou=1.0, weight_road=2.0, smooth=1e-6,
                  binary_targets=False, tile_rows=None):
    assert y_pred.shape == y_true.shape
    n_elems = int(y_pred.size)
    assert n_elems > 0

    yp = jnp.ravel(y_pred)   # keep native dtypes; cast happens in-kernel
    yt = jnp.ravel(y_true)

    # Reshape to (rows, 128).  Only pad (a materializing copy) when the
    # element count is not a multiple of the lane width; the pad zeros
    # contribute exactly 0 to every partial sum.
    pad = (-n_elems) % _LANES
    if pad:
        yp = jnp.concatenate([yp, jnp.zeros((pad,), yp.dtype)])
        yt = jnp.concatenate([yt, jnp.zeros((pad,), yt.dtype)])
    rows = (n_elems + pad) // _LANES
    assert rows < 2 ** 31
    yp = yp.reshape(rows, _LANES)
    yt = yt.reshape(rows, _LANES)

    if tile_rows is None:
        tile_rows = _DEFAULT_TILE_ROWS
    # Never make the block (much) larger than the array; round up to 32
    # sublanes so the block shape is legal for f32/bf16/int8 inputs.
    tile_rows = -(-min(int(tile_rows), rows) // 32) * 32

    total_blocks = -(-rows // tile_rows)
    num_splits = _NUM_SPLITS if total_blocks >= _NUM_SPLITS else 1
    blocks_per_split = -(-total_blocks // num_splits)
    last_block = total_blocks - 1
    needs_mask = (rows % tile_rows) != 0
    has_clamped = (num_splits * blocks_per_split) != total_blocks

    kernel = functools.partial(
        _combined_loss_kernel,
        tile_rows=tile_rows,
        blocks_per_split=blocks_per_split,
        rows=rows,
        last_block=last_block,
        needs_mask=needs_mask,
        has_clamped=has_clamped,
        binary_targets=bool(binary_targets),
    )

    def in_map(c, s):
        # Clamp so the second split never issues a fully out-of-bounds DMA
        # when the block count is odd; clamped blocks are skipped in-kernel.
        return (jnp.minimum(c * blocks_per_split + s, last_block), 0)

    partials = pl.pallas_call(
        kernel,
        out_shape=jax.ShapeDtypeStruct((num_splits, 4, 8, _LANES), jnp.float32),
        grid_spec=pltpu.PrefetchScalarGridSpec(
            num_scalar_prefetch=0,
            grid=(num_splits, blocks_per_split),
            in_specs=[
                pl.BlockSpec((tile_rows, _LANES), in_map),
                pl.BlockSpec((tile_rows, _LANES), in_map),
            ],
            out_specs=pl.BlockSpec((1, 4, 8, _LANES), lambda c, s: (c, 0, 0, 0)),
            scratch_shapes=[pltpu.VMEM((4, 8, _LANES), jnp.float32)],
        ),
        compiler_params=pltpu.CompilerParams(
            dimension_semantics=("parallel", "arbitrary")),
    )(yp, yt)

    # Tiny epilogue in plain JAX: combine per-core / per-lane partial sums and
    # form the weighted loss (a handful of scalar flops).
    sums = jnp.sum(partials, axis=(0, 2, 3))  # (4,)
    bce_sum, inter, sum_t, sum_p = sums[0], sums[1], sums[2], sums[3]

    bce = bce_sum / jnp.float32(n_elems)
    dice = 1.0 - (2.0 * inter + smooth) / (sum_t + sum_p + smooth)
    iou = 1.0 - (inter + smooth) / (sum_t + sum_p - inter + smooth)
    road = 1.0 - (inter + smooth) / (sum_t + smooth)

    total_w = weight_bce + weight_dice + weight_iou + weight_road
    return (weight_bce * bce + weight_dice * dice +
            weight_iou * iou + weight_road * road) / total_w


def _reference_loss(y_pred, y_true, *, weight_bce=1.0, weight_dice=1.0,
                    weight_iou=1.0, weight_road=2.0, smooth=1e-6):
    p = jnp.ravel(y_pred).astype(jnp.float32)
    t = jnp.ravel(y_true).astype(jnp.float32)
    log_p = jnp.maximum(jnp.log(p), -100.0)
    log_1mp = jnp.maximum(jnp.log(1.0 - p), -100.0)
    bce = jnp.mean(-(t * log_p + (1.0 - t) * log_1mp))
    inter = jnp.sum(t * p)
    dice = 1.0 - (2.0 * inter + smooth) / (jnp.sum(t) + jnp.sum(p) + smooth)
    iou = 1.0 - (inter + smooth) / (jnp.sum(t) + jnp.sum(p) - inter + smooth)
    road = 1.0 - (inter + smooth) / (jnp.sum(t) + smooth)
    tw = weight_bce + weight_dice + weight_iou + weight_road
    return (weight_bce * bce + weight_dice * dice +
            weight_iou * iou + weight_road * road) / tw


if __name__ == "__main__":
    key = jax.random.PRNGKey(0)
    k1, k2, k3, k4 = jax.random.split(key, 4)

    # Test 1: small segmentation-style inputs, soft targets, exact
    # torch.nn.BCELoss (two-log) path, single block / single split.
    shape1 = (2, 1, 16, 16)
    y_pred1 = jax.nn.sigmoid(jax.random.normal(k1, shape1, dtype=jnp.float32))
    y_true1 = jax.random.uniform(k2, shape1, dtype=jnp.float32)
    loss1 = jax.block_until_ready(combined_loss(y_pred1, y_true1))
    ref1 = _reference_loss(y_pred1, y_true1)
    assert jnp.allclose(loss1, ref1, rtol=1e-5, atol=1e-6), (loss1, ref1)

    # Test 2: bf16 predictions DMA'd in their native dtype, binary {0,1}
    # targets with the single-log BCE path, an element count that is not a
    # multiple of 128 (exercises pad + last-block row masking), and a small
    # tile override so each core split runs multiple accumulation steps with
    # an odd total block count (exercises the clamped/skipped second-split
    # block).
    shape2 = (2, 3, 37, 41)
    y_pred2 = jax.nn.sigmoid(
        jax.random.normal(k3, shape2, dtype=jnp.float32)).astype(jnp.bfloat16)
    y_true2 = (jax.random.uniform(k4, shape2) > 0.5).astype(jnp.float32)
    loss2 = jax.block_until_ready(
        combined_loss(y_pred2, y_true2, binary_targets=True, tile_rows=32))
    ref2 = _reference_loss(y_pred2, y_true2)
    assert jnp.allclose(loss2, ref2, rtol=1e-4, atol=1e-5), (loss2, ref2)

    print("KERNEL_OK")
</pallas_src>

<mosaic_0001>
module attributes {stable_mosaic.version = 11 : i64} {
  func.func @_combined_loss_kernel(%arg0: i32, %arg1: i32, %arg2: memref<32x128xf32, #tpu.memory_space<vmem>>, %arg3: memref<32x128xf32, #tpu.memory_space<vmem>>, %arg4: memref<1x4x8x128xf32, #tpu.memory_space<vmem>>, %arg5: memref<4x8x128xf32, #tpu.memory_space<vmem>>) attributes {dimension_semantics = [#tpu.dimension_semantics<parallel>, #tpu.dimension_semantics<arbitrary>], iteration_bounds = array<i64: 1, 1>, scalar_prefetch = 0 : i64, scratch_operands = 1 : i64, tpu.core_type = #tpu.core_type<tc>, window_params = [{transform_indices = @transform_0, window_bounds = array<i64: 32, 128>}, {transform_indices = @transform_1, window_bounds = array<i64: 32, 128>}, {transform_indices = @transform_2, window_bounds = array<i64: 1, 4, 8, 128>}]} {
    %c0_i32 = arith.constant 0 : i32
    %0 = arith.cmpi eq, %arg1, %c0_i32 : i32
    %1 = arith.extui %0 : i1 to i32
    %c0_i32_0 = arith.constant 0 : i32
    %2 = arith.cmpi ne, %1, %c0_i32_0 : i32
    scf.if %2 {
      %cst = arith.constant 0.000000e+00 : f32
      %16 = vector.broadcast %cst : f32 to vector<4x8x128xf32>
      %c0_10 = arith.constant 0 : index
      %c0_11 = arith.constant 0 : index
      %c0_12 = arith.constant 0 : index
      %17 = vector.load %arg5[%c0_10, %c0_11, %c0_12] : memref<4x8x128xf32, #tpu.memory_space<vmem>>, vector<4x8x128xf32>
      tpu.vector_store %arg5[%c0_10, %c0_11, %c0_12], %16 {strides = array<i32>} : memref<4x8x128xf32, #tpu.memory_space<vmem>>, vector<4x8x128xf32>,
    } else {
    }
    %c0 = arith.constant 0 : index
    %c0_1 = arith.constant 0 : index
    %3 = vector.load %arg2[%c0, %c0_1] : memref<32x128xf32, #tpu.memory_space<vmem>>, vector<32x128xf32>
    %c0_2 = arith.constant 0 : index
    %c0_3 = arith.constant 0 : index
    %4 = vector.load %arg3[%c0_2, %c0_3] : memref<32x128xf32, #tpu.memory_space<vmem>>, vector<32x128xf32>
    %c1_i32 = arith.constant 1 : i32
    %5 = arith.muli %arg0, %c1_i32 : i32
    %6 = arith.addi %5, %arg1 : i32
    %c0_i32_4 = arith.constant 0 : i32
    %7 = arith.cmpi slt, %6, %c0_i32_4 : i32
    %8 = arith.extui %7 : i1 to i32
    %c0_i32_5 = arith.constant 0 : i32
    %9 = arith.cmpi ne, %8, %c0_i32_5 : i32
    scf.if %9 {
      %16 = math.log %3 : vector<32x128xf32>
      %cst = arith.constant -1.000000e+02 : f32
      %17 = vector.broadcast %cst : f32 to vector<32x128xf32>
      %18 = arith.maximumf %16, %17 : vector<32x128xf32>
      %cst_10 = arith.constant 1.000000e+00 : f32
      %19 = vector.broadcast %cst_10 : f32 to vector<32x128xf32>
      %20 = arith.subf %19, %3 : vector<32x128xf32>
      %21 = math.log %20 : vector<32x128xf32>
      %cst_11 = arith.constant -1.000000e+02 : f32
      %22 = vector.broadcast %cst_11 : f32 to vector<32x128xf32>
      %23 = arith.maximumf %21, %22 : vector<32x128xf32>
      %24 = arith.mulf %4, %18 : vector<32x128xf32>
      %cst_12 = arith.constant 1.000000e+00 : f32
      %25 = vector.broadcast %cst_12 : f32 to vector<32x128xf32>
      %26 = arith.subf %25, %4 : vector<32x128xf32>
      %27 = arith.mulf %26, %23 : vector<32x128xf32>
      %28 = arith.addf %24, %27 : vector<32x128xf32>
      %cst_13 = arith.constant 0.000000e+00 : f32
      %29 = vector.broadcast %cst_13 : f32 to vector<32x128xf32>
      %30 = arith.subf %29, %28 : vector<32x128xf32>
      %c0_14 = arith.constant 0 : index
      %c0_15 = arith.constant 0 : index
      %c0_16 = arith.constant 0 : index
      %31 = vector.load %arg5[%c0_14, %c0_15, %c0_16] : memref<4x8x128xf32, #tpu.memory_space<vmem>>, vector<1x8x128xf32>
      %32 = vector.shape_cast %31 : vector<1x8x128xf32> to vector<8x128xf32>
      %33 = vector.shape_cast %30 : vector<32x128xf32> to vector<4x8x128xf32>
      %cst_17 = arith.constant dense<0.000000e+00> : vector<8x128xf32>
      %34 = vector.multi_reduction <add>, %33, %cst_17 [0] : vector<4x8x128xf32> to vector<8x128xf32>
      %35 = arith.addf %32, %34 : vector<8x128xf32>
      %c0_18 = arith.constant 0 : index
      %c0_19 = arith.constant 0 : index
      %c0_20 = arith.constant 0 : index
      %36 = vector.load %arg5[%c0_18, %c0_19, %c0_20] : memref<4x8x128xf32, #tpu.memory_space<vmem>>, vector<1x8x128xf32>
      %37 = vector.shape_cast %36 : vector<1x8x128xf32> to vector<8x128xf32>
      %38 = vector.shape_cast %35 : vector<8x128xf32> to vector<1x8x128xf32>
      tpu.vector_store %arg5[%c0_18, %c0_19, %c0_20], %38 {strides = array<i32>} : memref<4x8x128xf32, #tpu.memory_space<vmem>>, vector<1x8x128xf32>,
      %c1 = arith.constant 1 : index
      %c0_21 = arith.constant 0 : index
      %c0_22 = arith.constant 0 : index
      %39 = vector.load %arg5[%c1, %c0_21, %c0_22] : memref<4x8x128xf32, #tpu.memory_space<vmem>>, vector<1x8x128xf32>
      %40 = vector.shape_cast %39 : vector<1x8x128xf32> to vector<8x128xf32>
      %41 = arith.mulf %4, %3 : vector<32x128xf32>
      %42 = vector.shape_cast %41 : vector<32x128xf32> to vector<4x8x128xf32>
      %cst_23 = arith.constant dense<0.000000e+00> : vector<8x128xf32>
      %43 = vector.multi_reduction <add>, %42, %cst_23 [0] : vector<4x8x128xf32> to vector<8x128xf32>
      %44 = arith.addf %40, %43 : vector<8x128xf32>
      %c1_24 = arith.constant 1 : index
      %c0_25 = arith.constant 0 : index
      %c0_26 = arith.constant 0 : index
      %45 = vector.load %arg5[%c1_24, %c0_25, %c0_26] : memref<4x8x128xf32, #tpu.memory_space<vmem>>, vector<1x8x128xf32>
      %46 = vector.shape_cast %45 : vector<1x8x128xf32> to vector<8x128xf32>
      %47 = vector.shape_cast %44 : vector<8x128xf32> to vector<1x8x128xf32>
      tpu.vector_store %arg5[%c1_24, %c0_25, %c0_26], %47 {strides = array<i32>} : memref<4x8x128xf32, #tpu.memory_space<vmem>>, vector<1x8x128xf32>,
      %c2 = arith.constant 2 : index
      %c0_27 = arith.constant 0 : index
      %c0_28 = arith.constant 0 : index
      %48 = vector.load %arg5[%c2, %c0_27, %c0_28] : memref<4x8x128xf32, #tpu.memory_space<vmem>>, vector<1x8x128xf32>
      %49 = vector.shape_cast %48 : vector<1x8x128xf32> to vector<8x128xf32>
      %50 = vector.shape_cast %4 : vector<32x128xf32> to vector<4x8x128xf32>
      %cst_29 = arith.constant dense<0.000000e+00> : vector<8x128xf32>
      %51 = vector.multi_reduction <add>, %50, %cst_29 [0] : vector<4x8x128xf32> to vector<8x128xf32>
      %52 = arith.addf %49, %51 : vector<8x128xf32>
      %c2_30 = arith.constant 2 : index
      %c0_31 = arith.constant 0 : index
      %c0_32 = arith.constant 0 : index
      %53 = vector.load %arg5[%c2_30, %c0_31, %c0_32] : memref<4x8x128xf32, #tpu.memory_space<vmem>>, vector<1x8x128xf32>
      %54 = vector.shape_cast %53 : vector<1x8x128xf32> to vector<8x128xf32>
      %55 = vector.shape_cast %52 : vector<8x128xf32> to vector<1x8x128xf32>
      tpu.vector_store %arg5[%c2_30, %c0_31, %c0_32], %55 {strides = array<i32>} : memref<4x8x128xf32, #tpu.memory_space<vmem>>, vector<1x8x128xf32>,
      %c3 = arith.constant 3 : index
      %c0_33 = arith.constant 0 : index
      %c0_34 = arith.constant 0 : index
      %56 = vector.load %arg5[%c3, %c0_33, %c0_34] : memref<4x8x128xf32, #tpu.memory_space<vmem>>, vector<1x8x128xf32>
      %57 = vector.shape_cast %56 : vector<1x8x128xf32> to vector<8x128xf32>
      %58 = vector.shape_cast %3 : vector<32x128xf32> to vector<4x8x128xf32>
      %cst_35 = arith.constant dense<0.000000e+00> : vector<8x128xf32>
      %59 = vector.multi_reduction <add>, %58, %cst_35 [0] : vector<4x8x128xf32> to vector<8x128xf32>
      %60 = arith.addf %57, %59 : vector<8x128xf32>
      %c3_36 = arith.constant 3 : index
      %c0_37 = arith.constant 0 : index
      %c0_38 = arith.constant 0 : index
      %61 = vector.load %arg5[%c3_36, %c0_37, %c0_38] : memref<4x8x128xf32, #tpu.memory_space<vmem>>, vector<1x8x128xf32>
      %62 = vector.shape_cast %61 : vector<1x8x128xf32> to vector<8x128xf32>
      %63 = vector.shape_cast %60 : vector<8x128xf32> to vector<1x8x128xf32>
      tpu.vector_store %arg5[%c3_36, %c0_37, %c0_38], %63 {strides = array<i32>} : memref<4x8x128xf32, #tpu.memory_space<vmem>>, vector<1x8x128xf32>,
    } else {
    }
    %c0_i32_6 = arith.constant 0 : i32
    %10 = arith.cmpi eq, %6, %c0_i32_6 : i32
    %11 = arith.extui %10 : i1 to i32
    %c0_i32_7 = arith.constant 0 : i32
    %12 = arith.cmpi ne, %11, %c0_i32_7 : i32
    scf.if %12 {
      %16 = tpu.iota {dimensions = array<i32: 0>} : vector<32x128xi32>
      %c4_i32 = arith.constant 4 : i32
      %17 = vector.broadcast %c4_i32 : i32 to vector<32x128xi32>
      %18 = arith.cmpi slt, %16, %17 : vector<32x128xi32>
      %cst = arith.constant 0.000000e+00 : f32
      %19 = vector.broadcast %cst : f32 to vector<32x128xf32>
      %20 = arith.select %18, %3, %19 : vector<32x128xi1>, vector<32x128xf32>
      %cst_10 = arith.constant 0.000000e+00 : f32
      %21 = vector.broadcast %cst_10 : f32 to vector<32x128xf32>
      %22 = arith.select %18, %4, %21 : vector<32x128xi1>, vector<32x128xf32>
      %23 = math.log %20 : vector<32x128xf32>
      %cst_11 = arith.constant -1.000000e+02 : f32
      %24 = vector.broadcast %cst_11 : f32 to vector<32x128xf32>
      %25 = arith.maximumf %23, %24 : vector<32x128xf32>
      %cst_12 = arith.constant 1.000000e+00 : f32
      %26 = vector.broadcast %cst_12 : f32 to vector<32x128xf32>
      %27 = arith.subf %26, %20 : vector<32x128xf32>
      %28 = math.log %27 : vector<32x128xf32>
      %cst_13 = arith.constant -1.000000e+02 : f32
      %29 = vector.broadcast %cst_13 : f32 to vector<32x128xf32>
      %30 = arith.maximumf %28, %29 : vector<32x128xf32>
      %31 = arith.mulf %22, %25 : vector<32x128xf32>
      %cst_14 = arith.constant 1.000000e+00 : f32
      %32 = vector.broadcast %cst_14 : f32 to vector<32x128xf32>
      %33 = arith.subf %32, %22 : vector<32x128xf32>
      %34 = arith.mulf %33, %30 : vector<32x128xf32>
      %35 = arith.addf %31, %34 : vector<32x128xf32>
      %cst_15 = arith.constant 0.000000e+00 : f32
      %36 = vector.broadcast %cst_15 : f32 to vector<32x128xf32>
      %37 = arith.subf %36, %35 : vector<32x128xf32>
      %c0_16 = arith.constant 0 : index
      %c0_17 = arith.constant 0 : index
      %c0_18 = arith.constant 0 : index
      %38 = vector.load %arg5[%c0_16, %c0_17, %c0_18] : memref<4x8x128xf32, #tpu.memory_space<vmem>>, vector<1x8x128xf32>
      %39 = vector.shape_cast %38 : vector<1x8x128xf32> to vector<8x128xf32>
      %40 = vector.shape_cast %37 : vector<32x128xf32> to vector<4x8x128xf32>
      %cst_19 = arith.constant dense<0.000000e+00> : vector<8x128xf32>
      %41 = vector.multi_reduction <add>, %40, %cst_19 [0] : vector<4x8x128xf32> to vector<8x128xf32>
      %42 = arith.addf %39, %41 : vector<8x128xf32>
      %c0_20 = arith.constant 0 : index
      %c0_21 = arith.constant 0 : index
      %c0_22 = arith.constant 0 : index
      %43 = vector.load %arg5[%c0_20, %c0_21, %c0_22] : memref<4x8x128xf32, #tpu.memory_space<vmem>>, vector<1x8x128xf32>
      %44 = vector.shape_cast %43 : vector<1x8x128xf32> to vector<8x128xf32>
      %45 = vector.shape_cast %42 : vector<8x128xf32> to vector<1x8x128xf32>
      tpu.vector_store %arg5[%c0_20, %c0_21, %c0_22], %45 {strides = array<i32>} : memref<4x8x128xf32, #tpu.memory_space<vmem>>, vector<1x8x128xf32>,
      %c1 = arith.constant 1 : index
      %c0_23 = arith.constant 0 : index
      %c0_24 = arith.constant 0 : index
      %46 = vector.load %arg5[%c1, %c0_23, %c0_24] : memref<4x8x128xf32, #tpu.memory_space<vmem>>, vector<1x8x128xf32>
      %47 = vector.shape_cast %46 : vector<1x8x128xf32> to vector<8x128xf32>
      %48 = arith.mulf %22, %20 : vector<32x128xf32>
      %49 = vector.shape_cast %48 : vector<32x128xf32> to vector<4x8x128xf32>
      %cst_25 = arith.constant dense<0.000000e+00> : vector<8x128xf32>
      %50 = vector.multi_reduction <add>, %49, %cst_25 [0] : vector<4x8x128xf32> to vector<8x128xf32>
      %51 = arith.addf %47, %50 : vector<8x128xf32>
      %c1_26 = arith.constant 1 : index
      %c0_27 = arith.constant 0 : index
      %c0_28 = arith.constant 0 : index
      %52 = vector.load %arg5[%c1_26, %c0_27, %c0_28] : memref<4x8x128xf32, #tpu.memory_space<vmem>>, vector<1x8x128xf32>
      %53 = vector.shape_cast %52 : vector<1x8x128xf32> to vector<8x128xf32>
      %54 = vector.shape_cast %51 : vector<8x128xf32> to vector<1x8x128xf32>
      tpu.vector_store %arg5[%c1_26, %c0_27, %c0_28], %54 {strides = array<i32>} : memref<4x8x128xf32, #tpu.memory_space<vmem>>, vector<1x8x128xf32>,
      %c2 = arith.constant 2 : index
      %c0_29 = arith.constant 0 : index
      %c0_30 = arith.constant 0 : index
      %55 = vector.load %arg5[%c2, %c0_29, %c0_30] : memref<4x8x128xf32, #tpu.memory_space<vmem>>, vector<1x8x128xf32>
      %56 = vector.shape_cast %55 : vector<1x8x128xf32> to vector<8x128xf32>
      %57 = vector.shape_cast %22 : vector<32x128xf32> to vector<4x8x128xf32>
      %cst_31 = arith.constant dense<0.000000e+00> : vector<8x128xf32>
      %58 = vector.multi_reduction <add>, %57, %cst_31 [0] : vector<4x8x128xf32> to vector<8x128xf32>
      %59 = arith.addf %56, %58 : vector<8x128xf32>
      %c2_32 = arith.constant 2 : index
      %c0_33 = arith.constant 0 : index
      %c0_34 = arith.constant 0 : index
      %60 = vector.load %arg5[%c2_32, %c0_33, %c0_34] : memref<4x8x128xf32, #tpu.memory_space<vmem>>, vector<1x8x128xf32>
      %61 = vector.shape_cast %60 : vector<1x8x128xf32> to vector<8x128xf32>
      %62 = vector.shape_cast %59 : vector<8x128xf32> to vector<1x8x128xf32>
      tpu.vector_store %arg5[%c2_32, %c0_33, %c0_34], %62 {strides = array<i32>} : memref<4x8x128xf32, #tpu.memory_space<vmem>>, vector<1x8x128xf32>,
      %c3 = arith.constant 3 : index
      %c0_35 = arith.constant 0 : index
      %c0_36 = arith.constant 0 : index
      %63 = vector.load %arg5[%c3, %c0_35, %c0_36] : memref<4x8x128xf32, #tpu.memory_space<vmem>>, vector<1x8x128xf32>
      %64 = vector.shape_cast %63 : vector<1x8x128xf32> to vector<8x128xf32>
      %65 = vector.shape_cast %20 : vector<32x128xf32> to vector<4x8x128xf32>
      %cst_37 = arith.constant dense<0.000000e+00> : vector<8x128xf32>
      %66 = vector.multi_reduction <add>, %65, %cst_37 [0] : vector<4x8x128xf32> to vector<8x128xf32>
      %67 = arith.addf %64, %66 : vector<8x128xf32>
      %c3_38 = arith.constant 3 : index
      %c0_39 = arith.constant 0 : index
      %c0_40 = arith.constant 0 : index
      %68 = vector.load %arg5[%c3_38, %c0_39, %c0_40] : memref<4x8x128xf32, #tpu.memory_space<vmem>>, vector<1x8x128xf32>
      %69 = vector.shape_cast %68 : vector<1x8x128xf32> to vector<8x128xf32>
      %70 = vector.shape_cast %67 : vector<8x128xf32> to vector<1x8x128xf32>
      tpu.vector_store %arg5[%c3_38, %c0_39, %c0_40], %70 {strides = array<i32>} : memref<4x8x128xf32, #tpu.memory_space<vmem>>, vector<1x8x128xf32>,
    } else {
    }
    %c0_i32_8 = arith.constant 0 : i32
    %13 = arith.cmpi eq, %arg1, %c0_i32_8 : i32
    %14 = arith.extui %13 : i1 to i32
    %c0_i32_9 = arith.constant 0 : i32
    %15 = arith.cmpi ne, %14, %c0_i32_9 : i32
    scf.if %15 {
      %c0_10 = arith.constant 0 : index
      %c0_11 = arith.constant 0 : index
      %c0_12 = arith.constant 0 : index
      %16 = vector.load %arg5[%c0_10, %c0_11, %c0_12] : memref<4x8x128xf32, #tpu.memory_space<vmem>>, vector<4x8x128xf32>
      %c0_13 = arith.constant 0 : index
      %c0_14 = arith.constant 0 : index
      %c0_15 = arith.constant 0 : index
      %c0_16 = arith.constant 0 : index
      %17 = vector.load %arg4[%c0_13, %c0_14, %c0_15, %c0_16] : memref<1x4x8x128xf32, #tpu.memory_space<vmem>>, vector<1x4x8x128xf32>
      %18 = vector.shape_cast %17 : vector<1x4x8x128xf32> to vector<4x8x128xf32>
      %19 = vector.shape_cast %16 : vector<4x8x128xf32> to vector<1x4x8x128xf32>
      tpu.vector_store %arg4[%c0_13, %c0_14, %c0_15, %c0_16], %19 {strides = array<i32>} : memref<1x4x8x128xf32, #tpu.memory_space<vmem>>, vector<1x4x8x128xf32>,
    } else {
    }
    return
  }
  func.func @transform_0(%arg0: i32, %arg1: i32) -> (i32, i32) {
    %c1_i32 = arith.constant 1 : i32
    %0 = arith.muli %arg0, %c1_i32 : i32
    %1 = arith.addi %0, %arg1 : i32
    %c0_i32 = arith.constant 0 : i32
    %2 = arith.minsi %1, %c0_i32 : i32
    %c0_i32_0 = arith.constant 0 : i32
    %c0_i32_1 = arith.constant 0 : i32
    return %2, %c0_i32_0 : i32, i32
  }
  func.func @transform_1(%arg0: i32, %arg1: i32) -> (i32, i32) {
    %c1_i32 = arith.constant 1 : i32
    %0 = arith.muli %arg0, %c1_i32 : i32
    %1 = arith.addi %0, %arg1 : i32
    %c0_i32 = arith.constant 0 : i32
    %2 = arith.minsi %1, %c0_i32 : i32
    %c0_i32_0 = arith.constant 0 : i32
    %c0_i32_1 = arith.constant 0 : i32
    return %2, %c0_i32_0 : i32, i32
  }
  func.func @transform_2(%arg0: i32, %arg1: i32) -> (i32, i32, i32, i32) {
    %c0_i32 = arith.constant 0 : i32
    %c0_i32_0 = arith.constant 0 : i32
    %c0_i32_1 = arith.constant 0 : i32
    %c0_i32_2 = arith.constant 0 : i32
    return %arg0, %c0_i32, %c0_i32_0, %c0_i32_1 : i32, i32, i32, i32
  }
}

</mosaic_0001>

<bundles_post_ra>
// kernel: tpu_custom_call.1
= control target key start
LH: loop header
LB: loop body
LE: loop exit
PB: predicated region body
PF: predicated region fallthrough
CT: control target
= control target key end

     0   :  { %7 = vsyncpa [#allocation4], 0  ;;  %s446_s0 = inlined_call_operand.hbm [shape: f32[4,128], index: 0, kind: input, shape index: {}]   ;;  %s447_s1 = inlined_call_operand.hbm [shape: f32[4,128], index: 1, kind: input, shape index: {}]   ;;  %s448_s2 = inlined_call_operand.hbm [shape: f32[1,4,8,128], index: 2, kind: output, shape index: {}]  }
   0x1   :  { %8 = vsyncpa [#allocation7], 0 }
   0x2   :  { %9 = vsyncpa [#allocation5], 0 }
   0x3   :  { %20 = vsyncadd [#allocation4], 448  ;;  %s388_s9 = smov [#allocation3]   ;;  %s316_s13 = scalar_lea.hbm %s446_s0, 64 }
   0x4   :  { %s25_s10 = sshll.u32 %s388_s9, 4  ;;  %p317_p0 = scmp.ne.s32.totalorder %s446_s0, %s316_s13  ;;  %s26_s10 = int_to_ptr.vmem [resolvable:$true] %s25_s10 }
   0x5   :  { %p320_p1 = scmp.lt.u32.totalorder %s316_s13, %s446_s0 }
   0x7   :  { %p322_p2 = pnand %p320_p1, %p317_p0 }
   0x9   :  { %325 = shalt.err (!%p322_p2)
}
   0xa   :  { %s326_s18 = scalar_lea.vmem %s26_s10, 64  ;;  %s330_s19 = scalar_lea.vmem %s26_s10, 512 }
   0xb   :  { %p327_p3 = scmp.ne.s32.totalorder %s26_s10, %s326_s18  ;;  %p331_p4 = scmp.lt.s32.totalorder %s26_s10, %s26_s10 }
   0xc   :  { %p332_p5 = scmp.lt.s32.totalorder %s330_s19, %s326_s18 }
   0xe   :  { %p333_p6 = por %p332_p5, %p331_p4 }
  0x10   :  { %p334_p7 = pnand %p333_p6, %p327_p3 }
  0x12   :  { %337 = shalt.err (!%p334_p7)
}
  0x13   :  { %s389_s20 = smov 64   ;;  %s390_s21 = smov 4  }
  0x14   :  { %31 = dma.hbm_to_vmem [thread:$0]  %s446_s0, 64, %s26_s10, [#allocation4], %s389_s20, %s389_s20, %s390_s21  }
  0x15   :  { %42 = vsyncadd [#allocation7], 448  ;;  %s391_s24 = smov [#allocation6]   ;;  %s338_s28 = scalar_lea.hbm %s447_s1, 64 }
  0x16   :  { %s47_s25 = sshll.u32 %s391_s24, 4  ;;  %p339_p8 = scmp.ne.s32.totalorder %s447_s1, %s338_s28  ;;  %s48_s25 = int_to_ptr.vmem [resolvable:$true] %s47_s25 }
  0x17   :  { %p342_p9 = scmp.lt.u32.totalorder %s338_s28, %s447_s1 }
  0x19   :  { %p344_p10 = pnand %p342_p9, %p339_p8 }
  0x1b   :  { %347 = shalt.err (!%p344_p10)
}
  0x1c   :  { %s348_s5 = scalar_lea.vmem %s48_s25, 64  ;;  %s352_s0 = scalar_lea.vmem %s48_s25, 512 }
  0x1d   :  { %p349_p11 = scmp.ne.s32.totalorder %s48_s25, %s348_s5  ;;  %p353_p12 = scmp.lt.s32.totalorder %s48_s25, %s48_s25 }
  0x1e   :  { %p354_p13 = scmp.lt.s32.totalorder %s352_s0, %s348_s5 }
  0x20   :  { %p355_p0 = por %p354_p13, %p353_p12 }
  0x22   :  { %p356_p1 = pnand %p355_p0, %p349_p11 }
  0x24   :  { %359 = shalt.err (!%p356_p1)
}
  0x25   :  { %53 = dma.hbm_to_vmem [thread:$0]  %s447_s1, 64, %s48_s25, [#allocation7], %s389_s20, %s389_s20, %s390_s21  }
  0x26   :  { %382 = dma.done.wait [#allocation4], 512  }
  0x27   :  { %383 = vsyncadd [#allocation4], 4294966784 }
  0x28   :  { %384 = dma.done.wait [#allocation7], 512  }
  0x29   :  { %385 = vsyncadd [#allocation7], 4294966784  ;;  %v176_v0 = vlaneseq  ;;  %v80_v2 = vld [vmem:[#allocation3] sm:$0xff]  ;;  %s392_s1 = smov [#allocation8]  }
  0x2a   :  { %v84_v3 = vld [vmem:[#allocation6] sm:$0xff]  ;;  %s288_s8 = sshll.u32 %s392_s1, 4  ;;  %s289_s8 = int_to_ptr.vmem [resolvable:$true] %s288_s8 }
  0x2b   :  { %v177_v1 = vshrl.u32 %v176_v0, 7  ;;  %s360_s9 = scalar_lea.vmem %s289_s8, 512  ;;  %p365_p3 = scmp.lt.s32.totalorder %s289_s8, %s289_s8 }
  0x2c   :  { %p361_p2 = scmp.ne.s32.totalorder %s289_s8, %s360_s9  ;;  %p366_p4 = scmp.lt.s32.totalorder %s360_s9, %s360_s9 }
  0x2d   :  { %vm181_vm0 = vcmp.lt.s32.totalorder %v177_v1, 4 }
  0x2e   :  { %v185_v4 = vsel %vm181_vm0, %v80_v2, 0.0  ;;  %v189_v5 = vsel %vm181_vm0, %v84_v3, 0.0  ;;  %p367_p5 = por %p366_p4, %p365_p3 }
  0x2f   :  { %312 = vlog2.f32 %v185_v4  ;;  %v205_v6 = vsub.f32 1.0, %v185_v4  ;;  %281 = vst [vmem:[#allocation8 + $0x10] sm:$0xff] %v189_v5  ;;  %282 = vst [vmem:[#allocation8 + $0x18] sm:$0xff] %v185_v4  ;;  %v249_v7 = vmul.f32 %v189_v5, %v185_v4  ;;  %v225_v13 = vsub.f32 1.0, %v189_v5 }
  0x30   :  { %p368_p6 = pnand %p367_p5, %p361_p2 }
  0x31   :  { %314 = vlog2.f32 %v205_v6  ;;  %280 = vst [vmem:[#allocation8 + $0x8] sm:$0xff] %v249_v7 }
  0x39   :  { %v313_v8 = vpop.eup %312 }
  0x3a   :  { %v194_v9 = vmul.f32 0.6931472, %v313_v8 }
  0x3b   :  { %v315_v10 = vpop.eup %314 }
  0x3c   :  { %v201_v11 = vmax.f32 %v194_v9, -100.0  ;;  %v210_v12 = vmul.f32 0.6931472, %v315_v10 }
  0x3e   :  { %v217_v14 = vmax.f32 %v210_v12, -100.0  ;;  %v221_v15 = vmul.f32 %v201_v11, %v189_v5 }
  0x40   :  { %v229_v16 = vmul.f32 %v225_v13, %v217_v14 }
  0x42   :  { %v233_v17 = vadd.f32 %v229_v16, %v221_v15 }
  0x44   :  { %v237_v18 = vsub.f32 0.0, %v233_v17 }
  0x46   :  { %279 = vst [vmem:[#allocation8] sm:$0xff] %v237_v18 }
  0x47   :  { %371 = shalt.err (!%p368_p6)
}
  0x48   :  { %s372_s12 = scalar_lea.hbm %s448_s2, 512 }
  0x49   :  { %p373_p7 = scmp.ne.s32.totalorder %s448_s2, %s372_s12  ;;  %p376_p8 = scmp.lt.u32.totalorder %s372_s12, %s448_s2 }
  0x4b   :  { %p378_p9 = pnand %p376_p8, %p373_p7 }
  0x4d   :  { %381 = shalt.err (!%p378_p9)
}
  0x4e   :  { %s393_s17 = smov 128   ;;  %s394_s18 = smov 8  }
  0x4f   :  { %294 = dma.vmem_to_hbm [thread:$0]  %s289_s8, 512, %s448_s2, [#allocation5], %s393_s17, %s393_s17, %s394_s18  }
  0x50   :  { %386 = dma.done.wait [#allocation5], 512  }
  0x51   :  { %387 = vsyncadd [#allocation5], 4294966784 }
  0x52   :  { %298 = vsyncpa [#allocation4], 1 }
  0x53   :  { %299 = vsyncpa [#allocation7], 1 }
  0x54   :  { %300 = vsyncpa [#allocation5], 1 }

</bundles_post_ra>
